<compile_context>
chip_gen: v6e
topology: v6e:2x2x1
jax: 0.10.0
libtpu: 0.0.40
codegen_flags: <defaults>
</compile_context>

<pallas_src>
import functools

import jax
import jax.numpy as jnp
from jax import lax
from jax.experimental import pallas as pl
from jax.experimental.pallas import tpu as pltpu

LN_EPS = 1e-12  # BertLayerNorm default variance epsilon


def _bert_self_output_kernel(x_ref, res_ref, wt_ref, b_ref, g_ref, beta_ref, o_ref):
    # x_ref:    (tm, H)  hidden_states tile (native dtype; MXU widens to f32)
    # res_ref:  (tm, H)  input_tensor (residual) tile
    # wt_ref:   (H, H)   dense weight pre-transposed to [in, out] (plain MXU layout)
    # b_ref, g_ref, beta_ref: (1, H) f32 bias / LN gamma / LN beta
    h = jnp.dot(x_ref[...], wt_ref[...], preferred_element_type=jnp.float32)

    # TODO(synk): dropout is identity (inference / p=0); training-mode dropout would use
    # pltpu.prng_seed + pltpu.prng_random_bits.

    # bias + residual + LayerNorm over the hidden (lane) axis, all on the f32 accumulator.
    y = h + b_ref[...] + res_ref[...].astype(jnp.float32)
    u = jnp.mean(y, axis=-1, keepdims=True)
    d = y - u
    var = jnp.mean(d * d, axis=-1, keepdims=True)
    out = d * lax.rsqrt(var + LN_EPS) * g_ref[...] + beta_ref[...]
    o_ref[...] = out.astype(o_ref.dtype)


def _round_up(x, m):
    return (x + m - 1) // m * m


def _const_spec(shape):
    """BlockSpec for a grid-invariant operand; single-buffered when supported."""
    index_map = lambda i: (0, 0)
    if hasattr(pl, "Buffered"):
        try:
            return pl.BlockSpec(shape, index_map, pipeline_mode=pl.Buffered(1))
        except TypeError:  # older jax without BlockSpec(pipeline_mode=...)
            pass
    return pl.BlockSpec(shape, index_map)


@functools.partial(jax.jit, static_argnames=("block_rows", "compute_dtype"))
def bert_self_output(hidden_states, input_tensor, weight, bias, gamma, beta,
                     block_rows=512, compute_dtype=None):
    """hidden_states, input_tensor: [B, S, H]; weight: [H, H] in nn.Linear [out, in]
    layout; bias/gamma/beta: [H].  compute_dtype (e.g. jnp.bfloat16) optionally casts the
    large slabs + weight once here (accumulation and LayerNorm stay f32 in-kernel)."""
    B, S, H = hidden_states.shape
    rows = B * S

    io_dtype = jnp.dtype(compute_dtype) if compute_dtype is not None else hidden_states.dtype
    x2 = hidden_states.reshape(rows, H).astype(io_dtype)
    r2 = input_tensor.reshape(rows, H).astype(io_dtype)
    # One-time O(H^2) transpose to [in, out]: guarantees no per-grid-step weight transpose.
    wt = weight.T.astype(io_dtype)
    # Tiny per-lane vectors: cast to f32 once so the kernel does no per-tile cast work.
    b2 = bias.astype(jnp.float32).reshape(1, H)
    g2 = gamma.astype(jnp.float32).reshape(1, H)
    beta2 = beta.astype(jnp.float32).reshape(1, H)

    # --- row-tile choice (sublane alignment: f32 -> 8, bf16 -> 16, 8-bit -> 32) ---------
    itemsize = jnp.dtype(io_dtype).itemsize
    sub = {1: 32, 2: 16}.get(itemsize, 8)
    if rows <= sub:
        block_rows = rows                         # block == full dim: always legal
    elif rows < block_rows:
        block_rows = (rows // sub) * sub          # largest aligned tile <= rows
    else:
        block_rows = _round_up(block_rows, sub)

    # --- VMEM budget, re-derived for v7x's 64 MiB/TC (>= 16 MiB headroom kept) ----------
    def vmem_need(bm):
        io = 3 * 2 * bm * H * itemsize            # x / res / out tiles, double-buffered
        w = H * H * itemsize                      # resident weight (single-buffered)
        vecs = 3 * H * 4                          # bias / gamma / beta
        epi = 4 * bm * H * 4                      # f32 LN intermediates (h, y, d, out)
        return io + w + vecs + epi

    budget = 44 * 1024 * 1024
    while block_rows > sub and vmem_need(block_rows) > budget:
        block_rows = max(sub, _round_up(block_rows // 2, sub))
    # 8 MiB slack also covers the weight's 2nd buffer if Buffered(1) is unavailable.
    vmem_limit = int(min(max(vmem_need(block_rows) + (8 << 20), 32 << 20), 48 << 20))

    grid = (pl.cdiv(rows, block_rows),)           # last block may be partial (masked writes)
    out_dtype = io_dtype

    # Reuse the residual slab's HBM buffer for the output.  Truly in-place when that buffer
    # is dead/donatable at this point (typical inside a larger jitted network); otherwise
    # XLA inserts a single defensive copy.  Safe because the residual and output BlockSpecs
    # share the same index map (tile i is fully read before tile i is written back).
    aliases = {1: 0} if r2.dtype == out_dtype else {}

    out = pl.pallas_call(
        _bert_self_output_kernel,
        out_shape=jax.ShapeDtypeStruct((rows, H), out_dtype),
        grid_spec=pltpu.PrefetchScalarGridSpec(
            num_scalar_prefetch=0,
            grid=grid,
            in_specs=[
                pl.BlockSpec((block_rows, H), lambda i: (i, 0)),   # hidden_states tile
                pl.BlockSpec((block_rows, H), lambda i: (i, 0)),   # residual tile
                _const_spec((H, H)),                               # weight [in, out]
                _const_spec((1, H)),                               # bias   (f32)
                _const_spec((1, H)),                               # gamma  (f32)
                _const_spec((1, H)),                               # beta   (f32)
            ],
            out_specs=pl.BlockSpec((block_rows, H), lambda i: (i, 0)),
        ),
        input_output_aliases=aliases,
        compiler_params=pltpu.CompilerParams(
            dimension_semantics=("parallel",),     # row grid shards across v7x's 2 TCs
            vmem_limit_bytes=vmem_limit,
        ),
    )(x2, r2, wt, b2, g2, beta2)

    return out.reshape(B, S, H)


def _reference(hidden_states, input_tensor, weight, bias, gamma, beta):
    h = jnp.einsum("bsh,oh->bso", hidden_states, weight) + bias
    y = h + input_tensor
    u = jnp.mean(y, axis=-1, keepdims=True)
    s = jnp.mean((y - u) ** 2, axis=-1, keepdims=True)
    return (y - u) / jnp.sqrt(s + LN_EPS) * gamma + beta


if __name__ == "__main__":
    B, S, H = 2, 8, 32  # batch=2, seq=8, hidden=32

    key = jax.random.PRNGKey(0)
    k1, k2, k3, k4 = jax.random.split(key, 4)

    hidden_states = jax.random.normal(k1, (B, S, H), dtype=jnp.float32)
    input_tensor = jax.random.normal(k2, (B, S, H), dtype=jnp.float32)

    # Deterministic parameter init (nn.Linear: weight [out, in], bias [out]).
    weight = jax.random.normal(k3, (H, H), dtype=jnp.float32) * 0.02
    bias = jax.random.normal(k4, (H,), dtype=jnp.float32) * 0.02
    gamma = jnp.ones((H,), dtype=jnp.float32)   # BertLayerNorm gamma init
    beta = jnp.zeros((H,), dtype=jnp.float32)   # BertLayerNorm beta init

    ref = _reference(hidden_states, input_tensor, weight, bias, gamma, beta)

    # 1) f32 path -- exact module semantics.
    out = jax.block_until_ready(
        bert_self_output(hidden_states, input_tensor, weight, bias, gamma, beta))
    assert out.shape == (B, S, H)
    assert jnp.allclose(out, ref, atol=1e-4, rtol=1e-4)

    # 2) Ragged row count -> exercises the partial last tile (no wrapper padding).
    Sr = 7
    out_r = jax.block_until_ready(
        bert_self_output(hidden_states[:, :Sr], input_tensor[:, :Sr],
                         weight, bias, gamma, beta))
    assert out_r.shape == (B, Sr, H)
    assert jnp.allclose(out_r, ref[:, :Sr], atol=1e-4, rtol=1e-4)

    # 3) bf16 I/O path (recommended on v6e/v7x): f32 accumulation + f32 LN, looser tolerance.
    out_bf16 = jax.block_until_ready(
        bert_self_output(hidden_states, input_tensor, weight, bias, gamma, beta,
                         compute_dtype=jnp.bfloat16))
    assert jnp.allclose(out_bf16.astype(jnp.float32), ref, atol=5e-2, rtol=5e-2)

    print("KERNEL_OK")
</pallas_src>

<mosaic_0001>
module attributes {stable_mosaic.version = 11 : i64} {
  func.func @_bert_self_output_kernel(%arg0: i32, %arg1: memref<16x32xf32, #tpu.memory_space<vmem>>, %arg2: memref<16x32xf32, #tpu.memory_space<vmem>>, %arg3: memref<32x32xf32, #tpu.memory_space<vmem>>, %arg4: memref<1x32xf32, #tpu.memory_space<vmem>>, %arg5: memref<1x32xf32, #tpu.memory_space<vmem>>, %arg6: memref<1x32xf32, #tpu.memory_space<vmem>>, %arg7: memref<16x32xf32, #tpu.memory_space<vmem>>) attributes {dimension_semantics = [#tpu.dimension_semantics<parallel>], iteration_bounds = array<i64: 1>, scalar_prefetch = 0 : i64, scratch_operands = 0 : i64, tpu.core_type = #tpu.core_type<tc>, window_params = [{transform_indices = @transform_0, window_bounds = array<i64: 16, 32>}, {transform_indices = @transform_1, window_bounds = array<i64: 16, 32>}, {pipeline_mode = #tpu.pipeline_mode<synchronous>, transform_indices = @transform_2, window_bounds = array<i64: 32, 32>}, {pipeline_mode = #tpu.pipeline_mode<synchronous>, transform_indices = @transform_3, window_bounds = array<i64: 1, 32>}, {pipeline_mode = #tpu.pipeline_mode<synchronous>, transform_indices = @transform_4, window_bounds = array<i64: 1, 32>}, {pipeline_mode = #tpu.pipeline_mode<synchronous>, transform_indices = @transform_5, window_bounds = array<i64: 1, 32>}, {transform_indices = @transform_6, window_bounds = array<i64: 16, 32>}]} {
    %c0 = arith.constant 0 : index
    %c0_0 = arith.constant 0 : index
    %0 = vector.load %arg1[%c0, %c0_0] : memref<16x32xf32, #tpu.memory_space<vmem>>, vector<16x32xf32>
    %c0_1 = arith.constant 0 : index
    %c0_2 = arith.constant 0 : index
    %1 = vector.load %arg3[%c0_1, %c0_2] : memref<32x32xf32, #tpu.memory_space<vmem>>, vector<32x32xf32>
    %cst = arith.constant dense<0.000000e+00> : vector<16x32xf32>
    %2 = tpu.matmul %0, %1, %cst {dimension_numbers = #tpu.dot_dimension_numbers<[1], [0], [0], [1], [0, 0, 1, 1], [], []>} : vector<16x32xf32>, vector<32x32xf32>, vector<16x32xf32> -> vector<16x32xf32>
    %c0_3 = arith.constant 0 : index
    %c0_4 = arith.constant 0 : index
    %3 = vector.load %arg4[%c0_3, %c0_4] : memref<1x32xf32, #tpu.memory_space<vmem>>, vector<1x32xf32>
    %4 = vector.broadcast %3 : vector<1x32xf32> to vector<16x32xf32>
    %5 = arith.addf %2, %4 : vector<16x32xf32>
    %c0_5 = arith.constant 0 : index
    %c0_6 = arith.constant 0 : index
    %6 = vector.load %arg2[%c0_5, %c0_6] : memref<16x32xf32, #tpu.memory_space<vmem>>, vector<16x32xf32>
    %7 = arith.addf %5, %6 : vector<16x32xf32>
    %cst_7 = arith.constant dense<0.000000e+00> : vector<16xf32>
    %8 = vector.multi_reduction <add>, %7, %cst_7 [1] : vector<16x32xf32> to vector<16xf32>
    %9 = vector.shape_cast %8 : vector<16xf32> to vector<16x1xf32>
    %cst_8 = arith.constant 3.200000e+01 : f32
    %10 = vector.broadcast %cst_8 : f32 to vector<16x1xf32>
    %11 = arith.divf %9, %10 : vector<16x1xf32>
    %12 = vector.broadcast %11 : vector<16x1xf32> to vector<16x32xf32>
    %13 = arith.subf %7, %12 : vector<16x32xf32>
    %14 = arith.mulf %13, %13 : vector<16x32xf32>
    %cst_9 = arith.constant dense<0.000000e+00> : vector<16xf32>
    %15 = vector.multi_reduction <add>, %14, %cst_9 [1] : vector<16x32xf32> to vector<16xf32>
    %16 = vector.shape_cast %15 : vector<16xf32> to vector<16x1xf32>
    %cst_10 = arith.constant 3.200000e+01 : f32
    %17 = vector.broadcast %cst_10 : f32 to vector<16x1xf32>
    %18 = arith.divf %16, %17 : vector<16x1xf32>
    %cst_11 = arith.constant 9.99999996E-13 : f32
    %19 = vector.broadcast %cst_11 : f32 to vector<16x1xf32>
    %20 = arith.addf %18, %19 : vector<16x1xf32>
    %21 = math.rsqrt %20 : vector<16x1xf32>
    %22 = vector.broadcast %21 : vector<16x1xf32> to vector<16x32xf32>
    %23 = arith.mulf %13, %22 : vector<16x32xf32>
    %c0_12 = arith.constant 0 : index
    %c0_13 = arith.constant 0 : index
    %24 = vector.load %arg5[%c0_12, %c0_13] : memref<1x32xf32, #tpu.memory_space<vmem>>, vector<1x32xf32>
    %25 = vector.broadcast %24 : vector<1x32xf32> to vector<16x32xf32>
    %26 = arith.mulf %23, %25 : vector<16x32xf32>
    %c0_14 = arith.constant 0 : index
    %c0_15 = arith.constant 0 : index
    %27 = vector.load %arg6[%c0_14, %c0_15] : memref<1x32xf32, #tpu.memory_space<vmem>>, vector<1x32xf32>
    %28 = vector.broadcast %27 : vector<1x32xf32> to vector<16x32xf32>
    %29 = arith.addf %26, %28 : vector<16x32xf32>
    %c0_16 = arith.constant 0 : index
    %c0_17 = arith.constant 0 : index
    %30 = vector.load %arg7[%c0_16, %c0_17] : memref<16x32xf32, #tpu.memory_space<vmem>>, vector<16x32xf32>
    tpu.vector_store %arg7[%c0_16, %c0_17], %29 {strides = array<i32>} : memref<16x32xf32, #tpu.memory_space<vmem>>, vector<16x32xf32>,
    return
  }
  func.func @transform_0(%arg0: i32) -> (i32, i32) {
    %c0_i32 = arith.constant 0 : i32
    %c0_i32_0 = arith.constant 0 : i32
    return %arg0, %c0_i32 : i32, i32
  }
  func.func @transform_1(%arg0: i32) -> (i32, i32) {
    %c0_i32 = arith.constant 0 : i32
    %c0_i32_0 = arith.constant 0 : i32
    return %arg0, %c0_i32 : i32, i32
  }
  func.func @transform_2(%arg0: i32) -> (i32, i32) {
    %c0_i32 = arith.constant 0 : i32
    %c0_i32_0 = arith.constant 0 : i32
    %c0_i32_1 = arith.constant 0 : i32
    return %c0_i32, %c0_i32_0 : i32, i32
  }
  func.func @transform_3(%arg0: i32) -> (i32, i32) {
    %c0_i32 = arith.constant 0 : i32
    %c0_i32_0 = arith.constant 0 : i32
    %c0_i32_1 = arith.constant 0 : i32
    return %c0_i32, %c0_i32_0 : i32, i32
  }
  func.func @transform_4(%arg0: i32) -> (i32, i32) {
    %c0_i32 = arith.constant 0 : i32
    %c0_i32_0 = arith.constant 0 : i32
    %c0_i32_1 = arith.constant 0 : i32
    return %c0_i32, %c0_i32_0 : i32, i32
  }
  func.func @transform_5(%arg0: i32) -> (i32, i32) {
    %c0_i32 = arith.constant 0 : i32
    %c0_i32_0 = arith.constant 0 : i32
    %c0_i32_1 = arith.constant 0 : i32
    return %c0_i32, %c0_i32_0 : i32, i32
  }
  func.func @transform_6(%arg0: i32) -> (i32, i32) {
    %c0_i32 = arith.constant 0 : i32
    %c0_i32_0 = arith.constant 0 : i32
    return %arg0, %c0_i32 : i32, i32
  }
}

</mosaic_0001>

<bundles_post_ra>
// kernel: bert_self_output.1
= control target key start
LH: loop header
LB: loop body
LE: loop exit
PB: predicated region body
PF: predicated region fallthrough
CT: control target
= control target key end

     0   :  { %vm36_vm0 = vcmask 261120   ;;  %s281_s2 = inlined_call_operand.vmem [shape: f32[32,32], index: 2, kind: input, shape index: {}]   ;;  %s282_s0 = inlined_call_operand.vmem [shape: f32[16,32], index: 0, kind: input, shape index: {}]   ;;  %s283_s3 = inlined_call_operand.vmem [shape: f32[1,32], index: 3, kind: input, shape index: {}]   ;;  %s284_s1 = inlined_call_operand.vmem [shape: f32[16,32], index: 1, kind: input, shape index: {}, may-alias: {1,6}]   ;;  %s285_s4 = inlined_call_operand.vmem [shape: f32[1,32], index: 4, kind: input, shape index: {}]   ;;  %s286_s5 = inlined_call_operand.vmem [shape: f32[1,32], index: 5, kind: input, shape index: {}]   ;;  %s287_s6 = inlined_call_operand.vmem [shape: f32[16,32], index: 6, kind: output, shape index: {}, may-alias: {1,6}]  }
   0x1   :  { %v28_v0 = vld [vmem:[%s281_s2 + $0x18] sm:$0xff]  ;;  %v27_v1 = vld [vmem:[%s281_s2 + $0x10] sm:$0xff]  ;;  %v23_v2 = vld [vmem:[%s282_s0] sm:$0xff] }
   0x2   :  { %184 = vmatprep.subr.mxu0 %v28_v0  ;;  %v26_v3 = vld [vmem:[%s281_s2 + $0x8] sm:$0xff]  ;;  %192 = vmatprep.mubr.msk.f32.mxu0 %vm36_vm0, %v23_v2  ;;  %v25_v4 = vld [vmem:[%s281_s2] sm:$0xff] }
   0x3   :  { %185 = vmatpush3.msra.mxu0 %v28_v0  ;;  %v24_v5 = vld [vmem:[%s282_s0 + $0x8] sm:$0xff]  ;;  %v173_v7 = vld [vmem:[%s283_s3] ss:$0 sm:$0xff] }
   0x4   :  { %186 = vmatprep.subr.mxu0 %v27_v1  ;;  %v118_v9 = vld [vmem:[%s284_s1] sm:$0xff]  ;;  %v119_v12 = vld [vmem:[%s284_s1 + $0x8] sm:$0xff] }
   0x5   :  { %187 = vmatpush3.msra.mxu0 %v27_v1  ;;  %v176_v34 = vld [vmem:[%s285_s4] ss:$0 sm:$0xff] }
   0x6   :  { %188 = vmatprep.subr.mxu0 %v26_v3  ;;  %v177_v36 = vld [vmem:[%s286_s5] ss:$0 sm:$0xff] }
   0x7   :  { %189 = vmatpush3.msra.mxu0 %v26_v3 }
   0x8   :  { %190 = vmatprep.subr.mxu0 %v25_v4 }
   0x9   :  { %191 = vmatpush3.msra.mxu0 %v25_v4 }
   0xa   :  { %193 = vmatmul.mubr.msk.f32.vlgmr.msra.gmra.mxu0 %vm36_vm0, %v24_v5 }
  0xca   :  { %v194_v6 = vpop.f32.mrf.mxu0 }
  0xcb   :  { %v115_v10 = vadd.f32 %v194_v6, %v173_v7 }
  0xcc   :  { %v109_v8 = vpop.f32.mrf.mxu0 }
  0xcd   :  { %v110_v11 = vadd.f32 %v173_v7, %v109_v8  ;;  %v121_v15 = vadd.f32 %v119_v12, %v115_v10 }
  0xcf   :  { %v120_v13 = vadd.f32 %v118_v9, %v110_v11  ;;  %v125_v16 = vsel %vm36_vm0, %v121_v15, 0.0 }
  0xd1   :  { %v122_v14 = vsel %vm36_vm0, %v120_v13, 0.0 }
  0xd2   :  { %123 = vadd.xlane.f32.xlu0 %v122_v14 }
  0xd6   :  { %126 = vadd.xlane.f32.xlu0 %v125_v16 }
 0x15b   :  { %v124_v17 = vpop.xlane.xlu0 %123 }
 0x15c   :  { %v129_v18 = vmul.f32 0.03125, %v124_v17 }
 0x15e   :  { %v131_v19 = vsub.f32 %v120_v13, %v129_v18 }
 0x15f   :  { %v127_v20 = vpop.xlane.xlu0 %126 }
 0x160   :  { %v130_v21 = vmul.f32 0.03125, %v127_v20  ;;  %v133_v22 = vmul.f32 %v131_v19, %v131_v19 }
 0x162   :  { %v132_v23 = vsub.f32 %v121_v15, %v130_v21  ;;  %v135_v24 = vsel %vm36_vm0, %v133_v22, 0.0 }
 0x163   :  { %136 = vadd.xlane.f32.xlu1 %v135_v24 }
 0x164   :  { %v134_v25 = vmul.f32 %v132_v23, %v132_v23 }
 0x166   :  { %v138_v26 = vsel %vm36_vm0, %v134_v25, 0.0 }
 0x167   :  { %139 = vadd.xlane.f32.xlu1 %v138_v26 }
 0x1ec   :  { %v137_v27 = vpop.xlane.xlu1 %136 }
 0x1ed   :  { %v141_v28 = vmul.f32 0.03125, %v137_v27 }
 0x1ef   :  { %v143_v29 = vadd.f32 1e-12, %v141_v28 }
 0x1f0   :  { %v140_v30 = vpop.xlane.xlu1 %139 }
 0x1f1   :  { %195 = vrsqrt.f32 %v143_v29  ;;  %v142_v31 = vmul.f32 0.03125, %v140_v30 }
 0x1f3   :  { %v144_v32 = vadd.f32 1e-12, %v142_v31 }
 0x1f5   :  { %197 = vrsqrt.f32 %v144_v32 }
 0x1fe   :  { %v196_v33 = vpop.eup %195 }
 0x1ff   :  { %v147_v35 = vmul.f32 %v196_v33, %v131_v19 }
 0x201   :  { %v156_v37 = vmul.f32 %v176_v34, %v147_v35 }
 0x202   :  { %v198_v38 = vpop.eup %197 }
 0x203   :  { %v165_v39 = vadd.f32 %v177_v36, %v156_v37  ;;  %v148_v40 = vmul.f32 %v198_v38, %v132_v23 }
 0x205   :  { %167 = vst.msk [vmem:[%s287_s6] sm:$0xff] %vm36_vm0, %v165_v39  ;;  %v157_v41 = vmul.f32 %v176_v34, %v148_v40 }
 0x207   :  { %v166_v42 = vadd.f32 %v177_v36, %v157_v41 }
 0x209   :  { %168 = vst.msk [vmem:[%s287_s6 + $0x8] sm:$0xff] %vm36_vm0, %v166_v42 }

</bundles_post_ra>
